<compile_context>
chip_gen: v7x
topology: tpu7x:2x2x1
jax: 0.10.0
libtpu: 0.0.40
codegen_flags: <defaults>
</compile_context>

<pallas_src>
import functools

import jax
import jax.numpy as jnp
from jax.experimental import pallas as pl
from jax.experimental.pallas import tpu as pltpu

LANE = 128


# ----------------------------------------------------------------------------
# small helpers
# ----------------------------------------------------------------------------
def _rup(x, m):
    return -(-x // m) * m


def _row_tile(mp, cap=512):
    """Largest row tile (multiple of 8) <= cap that divides mp."""
    for t in (512, 256, 128, 64, 32, 16, 8):
        if t <= cap and mp % t == 0:
            return t
    return mp


def _col_tile(kp, cap=512):
    """Largest lane-aligned (multiple of 128) tile <= cap that divides kp."""
    for t in (512, 256, 128):
        if t <= cap and kp % t == 0:
            return t
    return kp


def _pad2d(a, rows, cols, dtype):
    r, c = a.shape
    return jnp.zeros((rows, cols), dtype).at[:r, :c].set(a.astype(dtype))


# ----------------------------------------------------------------------------
# Pallas kernels
# ----------------------------------------------------------------------------
def _sage_fused_kernel(a_ref, xs_ref, xd_ref, dinv_ref, wl_ref, wr_ref, b_ref,
                       o_ref, acc_ref, *, relu):
    """Fused SAGEConv: out = relu( mean(A@X_src) @ Wl + X_dst @ Wr + b ).

    Grid = (M tiles ["parallel"], K tiles over source nodes ["arbitrary"]).
    acc_ref accumulates the (unnormalized) neighbor sums in f32; the mean,
    both weight matmuls, bias and relu happen in the finalize step.
    """
    k = pl.program_id(1)

    @pl.when(k == 0)
    def _init():
        acc_ref[...] = jnp.zeros_like(acc_ref)

    # bf16 x bf16 -> f32 accumulation on the MXU
    acc_ref[...] += jnp.dot(a_ref[...], xs_ref[...],
                            preferred_element_type=jnp.float32)

    @pl.when(k == pl.num_programs(1) - 1)
    def _finalize():
        aggr = acc_ref[...] * dinv_ref[...]                      # mean, f32
        y = jnp.dot(aggr.astype(jnp.bfloat16), wl_ref[...],
                    preferred_element_type=jnp.float32)
        y = y + jnp.dot(xd_ref[...], wr_ref[...],
                        preferred_element_type=jnp.float32)
        y = y + b_ref[...]
        if relu:
            y = jnp.maximum(y, 0.0)
        o_ref[...] = y.astype(o_ref.dtype)


def sage_conv_fused(adj, dinv, x_src, x_dst, wl, wr, b, *, relu,
                    out_dtype=jnp.bfloat16):
    """adj:[M,K] bf16 (edge counts), dinv:[M,1] f32, x_src:[K,Hs] bf16,
    x_dst:[M,Hd] bf16, wl:[Hs,N] bf16, wr:[Hd,N] bf16, b:[1,N] f32."""
    m, kp = adj.shape
    ks, hs = x_src.shape
    md, hd = x_dst.shape
    n = wl.shape[1]
    assert kp == ks and m == md
    tm = _row_tile(m)
    tk = _col_tile(kp)
    grid = (m // tm, kp // tk)
    return pl.pallas_call(
        functools.partial(_sage_fused_kernel, relu=relu),
        out_shape=jax.ShapeDtypeStruct((m, n), out_dtype),
        grid_spec=pltpu.PrefetchScalarGridSpec(
            num_scalar_prefetch=0,
            grid=grid,
            in_specs=[
                pl.BlockSpec((tm, tk), lambda i, k: (i, k)),   # adjacency tile
                pl.BlockSpec((tk, hs), lambda i, k: (k, 0)),   # x_src tile
                pl.BlockSpec((tm, hd), lambda i, k: (i, 0)),   # x_dst tile
                pl.BlockSpec((tm, 1), lambda i, k: (i, 0)),    # 1/deg
                pl.BlockSpec((hs, n), lambda i, k: (0, 0)),    # Wl (resident)
                pl.BlockSpec((hd, n), lambda i, k: (0, 0)),    # Wr (resident)
                pl.BlockSpec((1, n), lambda i, k: (0, 0)),     # bias
            ],
            out_specs=pl.BlockSpec((tm, n), lambda i, k: (i, 0)),
            scratch_shapes=[pltpu.VMEM((tm, hs), jnp.float32)],
        ),
        compiler_params=pltpu.CompilerParams(
            dimension_semantics=("parallel", "arbitrary")),
    )(adj, x_src, x_dst, dinv, wl, wr, b)


def _linear_kernel(x_ref, w_ref, b_ref, o_ref, *, relu):
    y = jnp.dot(x_ref[...], w_ref[...], preferred_element_type=jnp.float32)
    y = y + b_ref[...]
    if relu:
        y = jnp.maximum(y, 0.0)
    o_ref[...] = y.astype(o_ref.dtype)


def pallas_linear(x, w, b, *, relu=False, out_dtype=jnp.bfloat16):
    """y = x @ w + b (+relu). x:[M,K] bf16, w:[K,N] bf16, b:[1,N] f32."""
    m, kdim = x.shape
    n = w.shape[1]
    tm = _row_tile(m)
    grid = (m // tm,)
    return pl.pallas_call(
        functools.partial(_linear_kernel, relu=relu),
        out_shape=jax.ShapeDtypeStruct((m, n), out_dtype),
        grid_spec=pltpu.PrefetchScalarGridSpec(
            num_scalar_prefetch=0,
            grid=grid,
            in_specs=[
                pl.BlockSpec((tm, kdim), lambda i: (i, 0)),
                pl.BlockSpec((kdim, n), lambda i: (0, 0)),
                pl.BlockSpec((1, n), lambda i: (0, 0)),
            ],
            out_specs=pl.BlockSpec((tm, n), lambda i: (i, 0)),
        ),
        compiler_params=pltpu.CompilerParams(
            dimension_semantics=("parallel",)),
    )(x, w, b)


def _decoder_kernel(zi_ref, zu_ref, w1a_ref, w1b_ref, b1_ref, w2_ref, b2_ref,
                    o_ref):
    # lin1 applied to the (virtual) concat via split weights, relu, lin2.
    h = jnp.dot(zi_ref[...], w1a_ref[...], preferred_element_type=jnp.float32)
    h = h + jnp.dot(zu_ref[...], w1b_ref[...],
                    preferred_element_type=jnp.float32)
    h = h + b1_ref[...]
    h = jnp.maximum(h, 0.0)
    y = jnp.dot(h.astype(jnp.bfloat16), w2_ref[...],
                preferred_element_type=jnp.float32)
    y = y + b2_ref[...]
    o_ref[...] = y


def pallas_edge_decoder(zi, zu, w1a, w1b, b1, w2, b2):
    """Fused EdgeDecoder MLP. zi/zu:[M,C] bf16, w1a/w1b:[C,H] bf16, b1:[1,H],
    w2:[H,128] bf16 (real logit in column 0), b2:[1,128]. Out [M,128] f32."""
    m, c = zi.shape
    h = w1a.shape[1]
    n = w2.shape[1]
    tm = _row_tile(m)
    grid = (m // tm,)
    return pl.pallas_call(
        _decoder_kernel,
        out_shape=jax.ShapeDtypeStruct((m, n), jnp.float32),
        grid_spec=pltpu.PrefetchScalarGridSpec(
            num_scalar_prefetch=0,
            grid=grid,
            in_specs=[
                pl.BlockSpec((tm, c), lambda i: (i, 0)),
                pl.BlockSpec((tm, c), lambda i: (i, 0)),
                pl.BlockSpec((c, h), lambda i: (0, 0)),
                pl.BlockSpec((c, h), lambda i: (0, 0)),
                pl.BlockSpec((1, h), lambda i: (0, 0)),
                pl.BlockSpec((h, n), lambda i: (0, 0)),
                pl.BlockSpec((1, n), lambda i: (0, 0)),
            ],
            out_specs=pl.BlockSpec((tm, n), lambda i: (i, 0)),
        ),
        compiler_params=pltpu.CompilerParams(
            dimension_semantics=("parallel",)),
    )(zi, zu, w1a, w1b, b1, w2, b2)


# ----------------------------------------------------------------------------
# Glue: adjacency build (once per edge type), parameter padding
# ----------------------------------------------------------------------------
def build_adj(edge_index, n_src_p, n_dst_p):
    """Unnormalized edge-count adjacency (bf16, exact small integers) plus
    1/deg (f32) so the mean is computed with an f32 accumulator in-kernel."""
    src, dst = edge_index[0], edge_index[1]
    adj = jnp.zeros((n_dst_p, n_src_p), jnp.float32).at[dst, src].add(1.0)
    deg = adj.sum(axis=1, keepdims=True)
    dinv = 1.0 / jnp.maximum(deg, 1.0)
    return adj.astype(jnp.bfloat16), dinv.astype(jnp.float32)


def prepare_params(p, hidden, out_c):
    """Pad all weights to lane-aligned shapes, cast to bf16 (biases f32),
    build the concatenated conv1 weights and the split decoder W1."""
    H = _rup(hidden, LANE)
    C = _rup(out_c, LANE)
    bf, f32 = jnp.bfloat16, jnp.float32

    def pw(w, r, c):
        return _pad2d(w, r, c, bf)

    def pb(b, c):
        return _pad2d(b.reshape(1, -1), 1, c, f32)

    def sage(sp):
        return {"wl": pw(sp["wl"], H, H), "wr": pw(sp["wr"], H, H),
                "b": pb(sp["b"], H)}

    conv1_dual = {
        "wl": jnp.concatenate([pw(p["ie_conv1"]["wl"], H, H),
                               pw(p["ue_conv1"]["wl"], H, H)], axis=1),
        "wr": jnp.concatenate([pw(p["ie_conv1"]["wr"], H, H),
                               pw(p["ue_conv1"]["wr"], H, H)], axis=1),
        "b": jnp.concatenate([pb(p["ie_conv1"]["b"], H),
                              pb(p["ue_conv1"]["b"], H)], axis=1),
    }

    w1 = p["dec_lin1"]["w"]          # (2*out_c, out_c)
    return {
        "H": H, "C": C,
        "user_emb": _pad2d(p["user_emb"], p["user_emb"].shape[0], H, bf),
        "item_emb": _pad2d(p["item_emb"], p["item_emb"].shape[0], H, bf),
        "conv1_dual": conv1_dual,
        "ie_conv2": sage(p["ie_conv2"]),
        "ue_conv2": sage(p["ue_conv2"]),
        "ue_conv3": sage(p["ue_conv3"]),
        "ie_lin": {"w": pw(p["ie_lin"]["w"], H, C),
                   "b": pb(p["ie_lin"]["b"], C)},
        "ue_lin": {"w": pw(p["ue_lin"]["w"], H, C),
                   "b": pb(p["ue_lin"]["b"], C)},
        "dec": {"w1a": pw(w1[:out_c], C, C),
                "w1b": pw(w1[out_c:], C, C),
                "b1": pb(p["dec_lin1"]["b"], C),
                "w2": pw(p["dec_lin2"]["w"], C, LANE),
                "b2": pb(p["dec_lin2"]["b"], LANE)},
    }


# ----------------------------------------------------------------------------
# Model forward (glue in JAX, all dense compute in Pallas)
# ----------------------------------------------------------------------------
def model_forward(pp, x_dict, edge_index_dict, edge_label_index):
    bf = jnp.bfloat16
    H = pp["H"]

    item_ids, user_ids = x_dict["item"], x_dict["user"]
    n_item, n_user = item_ids.shape[0], user_ids.shape[0]
    n_item_p, n_user_p = _rup(n_item, LANE), _rup(n_user, LANE)

    # Embedding lookups (gather glue) padded to lane-aligned node counts.
    item_x = jnp.zeros((n_item_p, H), bf).at[:n_item].set(
        pp["item_emb"][item_ids])
    user_x = jnp.zeros((n_user_p, H), bf).at[:n_user].set(
        pp["user_emb"][user_ids])

    e_ii = edge_index_dict[("item", "to", "item")]
    e_iu = edge_index_dict[("item", "rev_to", "user")]

    # Adjacency data built once per edge type and reused by every conv.
    adj_ii, dinv_ii = build_adj(e_ii, n_item_p, n_item_p)
    adj_iu, dinv_iu = build_adj(e_iu, n_item_p, n_user_p)

    # --- shared conv1 (ItemGNNEncoder.conv1 + UserGNNEncoder.conv1 fused:
    #     same adjacency / x_src / x_dst, concatenated weights) ---
    d = pp["conv1_dual"]
    both = sage_conv_fused(adj_ii, dinv_ii, item_x, item_x,
                           d["wl"], d["wr"], d["b"], relu=True)
    h_ie = both[:, :H]          # ItemGNNEncoder.conv1 output
    it_x = both[:, H:]          # UserGNNEncoder.conv1 output

    # --- ItemGNNEncoder ---
    p2 = pp["ie_conv2"]
    h = sage_conv_fused(adj_ii, dinv_ii, h_ie, h_ie,
                        p2["wl"], p2["wr"], p2["b"], relu=True)
    z_item = pallas_linear(h, pp["ie_lin"]["w"], pp["ie_lin"]["b"])

    # --- UserGNNEncoder ---
    p2 = pp["ue_conv2"]
    us_x = sage_conv_fused(adj_iu, dinv_iu, item_x, user_x,
                           p2["wl"], p2["wr"], p2["b"], relu=True)
    p3 = pp["ue_conv3"]
    us_x = sage_conv_fused(adj_iu, dinv_iu, it_x, us_x,
                           p3["wl"], p3["wr"], p3["b"], relu=True)
    z_user = pallas_linear(us_x, pp["ue_lin"]["w"], pp["ue_lin"]["b"])

    # --- EdgeDecoder (edge_dir == 'out' -> src=item, dst=user) ---
    row, col = edge_label_index[0], edge_label_index[1]
    n_label = row.shape[0]
    n_label_p = _rup(n_label, 8)
    row_p = jnp.zeros((n_label_p,), row.dtype).at[:n_label].set(row)
    col_p = jnp.zeros((n_label_p,), col.dtype).at[:n_label].set(col)
    zi = z_item[row_p]          # gather glue (small)
    zu = z_user[col_p]
    dec = pp["dec"]
    out = pallas_edge_decoder(zi, zu, dec["w1a"], dec["w1b"], dec["b1"],
                              dec["w2"], dec["b2"])
    return out[:n_label, 0]


# ----------------------------------------------------------------------------
# Deterministic parameter init (real sizes; padding done in prepare_params)
# ----------------------------------------------------------------------------
def _lin_params(key, d_in, d_out, scale=0.1):
    kw, kb = jax.random.split(key)
    return {"w": jax.random.normal(kw, (d_in, d_out), jnp.float32) * scale,
            "b": jax.random.normal(kb, (d_out,), jnp.float32) * scale}


def _sage_params(key, d_src, d_dst, d_out, scale=0.1):
    k1, k2, k3 = jax.random.split(key, 3)
    return {"wl": jax.random.normal(k1, (d_src, d_out), jnp.float32) * scale,
            "wr": jax.random.normal(k2, (d_dst, d_out), jnp.float32) * scale,
            "b": jax.random.normal(k3, (d_out,), jnp.float32) * scale}


def init_params(key, num_users, num_items, hidden, out_c):
    keys = jax.random.split(key, 12)
    return {
        "user_emb": jax.random.normal(keys[0], (num_users, hidden), jnp.float32),
        "item_emb": jax.random.normal(keys[1], (num_items, hidden), jnp.float32),
        "ie_conv1": _sage_params(keys[2], hidden, hidden, hidden),
        "ie_conv2": _sage_params(keys[3], hidden, hidden, hidden),
        "ie_lin": _lin_params(keys[4], hidden, out_c),
        "ue_conv1": _sage_params(keys[5], hidden, hidden, hidden),
        "ue_conv2": _sage_params(keys[6], hidden, hidden, hidden),
        "ue_conv3": _sage_params(keys[7], hidden, hidden, hidden),
        "ue_lin": _lin_params(keys[8], hidden, out_c),
        "dec_lin1": _lin_params(keys[9], 2 * out_c, out_c),
        "dec_lin2": _lin_params(keys[10], out_c, 1),
    }


# ----------------------------------------------------------------------------
if __name__ == "__main__":
    key = jax.random.PRNGKey(0)
    num_users, num_items = 6, 8
    hidden, out_c = 32, 32
    n_user, n_item = 6, 8
    n_e_ii, n_e_iu, n_label = 16, 12, 10

    kk = jax.random.split(key, 8)
    x_dict = {
        "user": jax.random.randint(kk[0], (n_user,), 0, num_users),
        "item": jax.random.randint(kk[1], (n_item,), 0, num_items),
    }
    edge_index_dict = {
        ("item", "to", "item"): jnp.stack([
            jax.random.randint(kk[2], (n_e_ii,), 0, n_item),
            jax.random.randint(kk[3], (n_e_ii,), 0, n_item)]),
        ("item", "rev_to", "user"): jnp.stack([
            jax.random.randint(kk[4], (n_e_iu,), 0, n_item),
            jax.random.randint(kk[5], (n_e_iu,), 0, n_user)]),
    }
    edge_label_index = jnp.stack([
        jax.random.randint(kk[6], (n_label,), 0, n_item),
        jax.random.randint(kk[7], (n_label,), 0, n_user)])

    params = init_params(jax.random.PRNGKey(42), num_users, num_items,
                         hidden, out_c)
    padded_params = prepare_params(params, hidden, out_c)

    out = model_forward(padded_params, x_dict, edge_index_dict,
                        edge_label_index)
    out = jax.block_until_ready(out)
    assert out.shape == (n_label,)
    assert jnp.all(jnp.isfinite(out))
    print("KERNEL_OK")
</pallas_src>

<mosaic_0001>
module attributes {stable_mosaic.version = 11 : i64} {
  func.func @_sage_fused_kernel(%arg0: i32, %arg1: i32, %arg2: memref<128x128xbf16, #tpu.memory_space<vmem>>, %arg3: memref<128x128xbf16, #tpu.memory_space<vmem>>, %arg4: memref<128x128xbf16, #tpu.memory_space<vmem>>, %arg5: memref<128x1xf32, #tpu.memory_space<vmem>>, %arg6: memref<128x256xbf16, #tpu.memory_space<vmem>>, %arg7: memref<128x256xbf16, #tpu.memory_space<vmem>>, %arg8: memref<1x256xf32, #tpu.memory_space<vmem>>, %arg9: memref<128x256xbf16, #tpu.memory_space<vmem>>, %arg10: memref<128x128xf32, #tpu.memory_space<vmem>>) attributes {dimension_semantics = [#tpu.dimension_semantics<parallel>, #tpu.dimension_semantics<arbitrary>], iteration_bounds = array<i64: 1, 1>, scalar_prefetch = 0 : i64, scratch_operands = 1 : i64, tpu.core_type = #tpu.core_type<tc>, window_params = [{transform_indices = @transform_0, window_bounds = array<i64: 128, 128>}, {transform_indices = @transform_1, window_bounds = array<i64: 128, 128>}, {transform_indices = @transform_2, window_bounds = array<i64: 128, 128>}, {transform_indices = @transform_3, window_bounds = array<i64: 128, 1>}, {pipeline_mode = #tpu.pipeline_mode<synchronous>, transform_indices = @transform_4, window_bounds = array<i64: 128, 256>}, {pipeline_mode = #tpu.pipeline_mode<synchronous>, transform_indices = @transform_5, window_bounds = array<i64: 128, 256>}, {pipeline_mode = #tpu.pipeline_mode<synchronous>, transform_indices = @transform_6, window_bounds = array<i64: 1, 256>}, {transform_indices = @transform_7, window_bounds = array<i64: 128, 256>}]} {
    %c0_i32 = arith.constant 0 : i32
    %0 = arith.cmpi eq, %arg1, %c0_i32 : i32
    %1 = arith.extui %0 : i1 to i32
    %c0_i32_0 = arith.constant 0 : i32
    %2 = arith.cmpi ne, %1, %c0_i32_0 : i32
    scf.if %2 {
      %cst_10 = arith.constant 0.000000e+00 : f32
      %12 = vector.broadcast %cst_10 : f32 to vector<128x128xf32>
      %c0_11 = arith.constant 0 : index
      %c0_12 = arith.constant 0 : index
      %13 = vector.load %arg10[%c0_11, %c0_12] : memref<128x128xf32, #tpu.memory_space<vmem>>, vector<128x128xf32>
      tpu.vector_store %arg10[%c0_11, %c0_12], %12 {strides = array<i32>} : memref<128x128xf32, #tpu.memory_space<vmem>>, vector<128x128xf32>,
    } else {
    }
    %c0 = arith.constant 0 : index
    %c0_1 = arith.constant 0 : index
    %3 = vector.load %arg10[%c0, %c0_1] : memref<128x128xf32, #tpu.memory_space<vmem>>, vector<128x128xf32>
    %c0_2 = arith.constant 0 : index
    %c0_3 = arith.constant 0 : index
    %4 = vector.load %arg2[%c0_2, %c0_3] : memref<128x128xbf16, #tpu.memory_space<vmem>>, vector<128x128xbf16>
    %c0_4 = arith.constant 0 : index
    %c0_5 = arith.constant 0 : index
    %5 = vector.load %arg3[%c0_4, %c0_5] : memref<128x128xbf16, #tpu.memory_space<vmem>>, vector<128x128xbf16>
    %cst = arith.constant dense<0.000000e+00> : vector<128x128xf32>
    %6 = tpu.matmul %4, %5, %cst {dimension_numbers = #tpu.dot_dimension_numbers<[1], [0], [0], [1], [0, 0, 1, 1], [], []>} : vector<128x128xbf16>, vector<128x128xbf16>, vector<128x128xf32> -> vector<128x128xf32>
    %7 = arith.addf %3, %6 : vector<128x128xf32>
    %c0_6 = arith.constant 0 : index
    %c0_7 = arith.constant 0 : index
    %8 = vector.load %arg10[%c0_6, %c0_7] : memref<128x128xf32, #tpu.memory_space<vmem>>, vector<128x128xf32>
    tpu.vector_store %arg10[%c0_6, %c0_7], %7 {strides = array<i32>} : memref<128x128xf32, #tpu.memory_space<vmem>>, vector<128x128xf32>,
    %c0_i32_8 = arith.constant 0 : i32
    %9 = arith.cmpi eq, %arg1, %c0_i32_8 : i32
    %10 = arith.extui %9 : i1 to i32
    %c0_i32_9 = arith.constant 0 : i32
    %11 = arith.cmpi ne, %10, %c0_i32_9 : i32
    scf.if %11 {
      %c0_10 = arith.constant 0 : index
      %c0_11 = arith.constant 0 : index
      %12 = vector.load %arg10[%c0_10, %c0_11] : memref<128x128xf32, #tpu.memory_space<vmem>>, vector<128x128xf32>
      %c0_12 = arith.constant 0 : index
      %c0_13 = arith.constant 0 : index
      %13 = vector.load %arg5[%c0_12, %c0_13] : memref<128x1xf32, #tpu.memory_space<vmem>>, vector<128x1xf32>
      %14 = vector.broadcast %13 : vector<128x1xf32> to vector<128x128xf32>
      %15 = arith.mulf %12, %14 : vector<128x128xf32>
      %16 = arith.truncf %15 : vector<128x128xf32> to vector<128x128xbf16>
      %c0_14 = arith.constant 0 : index
      %c0_15 = arith.constant 0 : index
      %17 = vector.load %arg6[%c0_14, %c0_15] : memref<128x256xbf16, #tpu.memory_space<vmem>>, vector<128x256xbf16>
      %cst_16 = arith.constant dense<0.000000e+00> : vector<128x256xf32>
      %18 = tpu.matmul %16, %17, %cst_16 {dimension_numbers = #tpu.dot_dimension_numbers<[1], [0], [0], [1], [0, 0, 1, 1], [], []>} : vector<128x128xbf16>, vector<128x256xbf16>, vector<128x256xf32> -> vector<128x256xf32>
      %c0_17 = arith.constant 0 : index
      %c0_18 = arith.constant 0 : index
      %19 = vector.load %arg4[%c0_17, %c0_18] : memref<128x128xbf16, #tpu.memory_space<vmem>>, vector<128x128xbf16>
      %c0_19 = arith.constant 0 : index
      %c0_20 = arith.constant 0 : index
      %20 = vector.load %arg7[%c0_19, %c0_20] : memref<128x256xbf16, #tpu.memory_space<vmem>>, vector<128x256xbf16>
      %cst_21 = arith.constant dense<0.000000e+00> : vector<128x256xf32>
      %21 = tpu.matmul %19, %20, %cst_21 {dimension_numbers = #tpu.dot_dimension_numbers<[1], [0], [0], [1], [0, 0, 1, 1], [], []>} : vector<128x128xbf16>, vector<128x256xbf16>, vector<128x256xf32> -> vector<128x256xf32>
      %22 = arith.addf %18, %21 : vector<128x256xf32>
      %c0_22 = arith.constant 0 : index
      %c0_23 = arith.constant 0 : index
      %23 = vector.load %arg8[%c0_22, %c0_23] : memref<1x256xf32, #tpu.memory_space<vmem>>, vector<1x256xf32>
      %24 = vector.broadcast %23 : vector<1x256xf32> to vector<128x256xf32>
      %25 = arith.addf %22, %24 : vector<128x256xf32>
      %cst_24 = arith.constant 0.000000e+00 : f32
      %26 = vector.broadcast %cst_24 : f32 to vector<128x256xf32>
      %27 = arith.maximumf %25, %26 : vector<128x256xf32>
      %28 = arith.truncf %27 : vector<128x256xf32> to vector<128x256xbf16>
      %c0_25 = arith.constant 0 : index
      %c0_26 = arith.constant 0 : index
      %29 = vector.load %arg9[%c0_25, %c0_26] : memref<128x256xbf16, #tpu.memory_space<vmem>>, vector<128x256xbf16>
      tpu.vector_store %arg9[%c0_25, %c0_26], %28 {strides = array<i32>} : memref<128x256xbf16, #tpu.memory_space<vmem>>, vector<128x256xbf16>,
    } else {
    }
    return
  }
  func.func @transform_0(%arg0: i32, %arg1: i32) -> (i32, i32) {
    %c0_i32 = arith.constant 0 : i32
    return %arg0, %arg1 : i32, i32
  }
  func.func @transform_1(%arg0: i32, %arg1: i32) -> (i32, i32) {
    %c0_i32 = arith.constant 0 : i32
    %c0_i32_0 = arith.constant 0 : i32
    return %arg1, %c0_i32 : i32, i32
  }
  func.func @transform_2(%arg0: i32, %arg1: i32) -> (i32, i32) {
    %c0_i32 = arith.constant 0 : i32
    %c0_i32_0 = arith.constant 0 : i32
    return %arg0, %c0_i32 : i32, i32
  }
  func.func @transform_3(%arg0: i32, %arg1: i32) -> (i32, i32) {
    %c0_i32 = arith.constant 0 : i32
    %c0_i32_0 = arith.constant 0 : i32
    return %arg0, %c0_i32 : i32, i32
  }
  func.func @transform_4(%arg0: i32, %arg1: i32) -> (i32, i32) {
    %c0_i32 = arith.constant 0 : i32
    %c0_i32_0 = arith.constant 0 : i32
    %c0_i32_1 = arith.constant 0 : i32
    return %c0_i32, %c0_i32_0 : i32, i32
  }
  func.func @transform_5(%arg0: i32, %arg1: i32) -> (i32, i32) {
    %c0_i32 = arith.constant 0 : i32
    %c0_i32_0 = arith.constant 0 : i32
    %c0_i32_1 = arith.constant 0 : i32
    return %c0_i32, %c0_i32_0 : i32, i32
  }
  func.func @transform_6(%arg0: i32, %arg1: i32) -> (i32, i32) {
    %c0_i32 = arith.constant 0 : i32
    %c0_i32_0 = arith.constant 0 : i32
    %c0_i32_1 = arith.constant 0 : i32
    return %c0_i32, %c0_i32_0 : i32, i32
  }
  func.func @transform_7(%arg0: i32, %arg1: i32) -> (i32, i32) {
    %c0_i32 = arith.constant 0 : i32
    %c0_i32_0 = arith.constant 0 : i32
    return %arg0, %c0_i32 : i32, i32
  }
}

</mosaic_0001>

<bundles_post_ra>
// kernel: tpu_custom_call.1
= control target key start
LH: loop header
LB: loop body
LE: loop exit
PB: predicated region body
PF: predicated region fallthrough
CT: control target
= control target key end

     0   :  { %12 = vsyncpa [#allocation4], 0  ;;  %s1934_s0 = inlined_call_operand.hbm [shape: bf16[128,128], index: 0, kind: input, shape index: {}]   ;;  %s1935_s1 = inlined_call_operand.hbm [shape: bf16[128,128], index: 1, kind: input, shape index: {}]   ;;  %s1936_s2 = inlined_call_operand.hbm [shape: bf16[128,128], index: 2, kind: input, shape index: {}]   ;;  %s1937_s3 = inlined_call_operand.vmem [shape: f32[128,1], index: 3, kind: input, shape index: {}]   ;;  %s1938_s4 = inlined_call_operand.vmem [shape: bf16[128,256], index: 4, kind: input, shape index: {}]   ;;  %s1939_s5 = inlined_call_operand.hbm [shape: bf16[128,256], index: 5, kind: input, shape index: {}]   ;;  %s1940_s6 = inlined_call_operand.vmem [shape: f32[1,256], index: 6, kind: input, shape index: {}]   ;;  %s1941_s7 = inlined_call_operand.hbm [shape: bf16[128,256], index: 7, kind: output, shape index: {}]  }
   0x1   :  { %13 = vsyncpa [#allocation7], 0 }
   0x2   :  { %14 = vsyncpa [#allocation10], 0 }
   0x3   :  { %15 = vsyncpa [#allocation5], 0  ;;  %s1590_s24 = smov [#allocation6]   ;;  %s1591_s26 = smov [#allocation3]  }
   0x4   :  { %s33_s25 = sshll.u32 %s1590_s24, 4  ;;  %s21_s27 = sshll.u32 %s1591_s26, 4  ;;  %s34_s25 = int_to_ptr.vmem [resolvable:$true] %s33_s25  ;;  %s1640_s27 = int_to_ptr.vmem [resolvable:$true] %s21_s27 }
   0x5   :  { %s1472_s30 = scalar_lea.hbm %s1935_s1, 1024 }
   0x6   :  { %p1473_p0 = scmp.ne.s32.totalorder %s1935_s1, %s1472_s30  ;;  %p1476_p1 = scmp.lt.u32.totalorder %s1472_s30, %s1935_s1 }
   0x8   :  { %p1478_p2 = pnand %p1476_p1, %p1473_p0 }
   0xa   :  { %1481 = shalt.err (!%p1478_p2)
}
   0xb   :  { %s1482_s12 = scalar_lea.vmem %s34_s25, 1024  ;;  %p1487_p4 = scmp.lt.s32.totalorder %s34_s25, %s34_s25 }
   0xc   :  { %p1483_p3 = scmp.ne.s32.totalorder %s34_s25, %s1482_s12  ;;  %p1488_p5 = scmp.lt.s32.totalorder %s1482_s12, %s1482_s12 }
   0xe   :  { %p1489_p6 = por %p1488_p5, %p1487_p4 }
  0x10   :  { %p1490_p7 = pnand %p1489_p6, %p1483_p3 }
  0x12   :  { %1493 = shalt.err (!%p1490_p7)
}
  0x13   :  { %s1592_s13 = smov 64   ;;  %s1593_s14 = smov 4  }
  0x14   :  { %39 = dma.hbm_to_vmem [thread:$0]  %s1935_s1, 1024, %s34_s25, [#allocation7], %s1592_s13, %s1592_s13, %s1593_s14  }
  0x15   :  { %s1494_s19 = scalar_lea.hbm %s1934_s0, 1024 }
  0x16   :  { %p1495_p8 = scmp.ne.s32.totalorder %s1934_s0, %s1494_s19  ;;  %p1498_p9 = scmp.lt.u32.totalorder %s1494_s19, %s1934_s0 }
  0x18   :  { %p1500_p10 = pnand %p1498_p9, %p1495_p8 }
  0x1a   :  { %1503 = shalt.err (!%p1500_p10)
}
  0x1b   :  { %s1504_s24 = scalar_lea.vmem %s1640_s27, 1024  ;;  %p1509_p12 = scmp.lt.s32.totalorder %s1640_s27, %s1640_s27 }
  0x1c   :  { %p1505_p11 = scmp.ne.s32.totalorder %s1640_s27, %s1504_s24  ;;  %p1510_p13 = scmp.lt.s32.totalorder %s1504_s24, %s1504_s24 }
  0x1e   :  { %p1511_p0 = por %p1510_p13, %p1509_p12 }
  0x20   :  { %p1512_p1 = pnand %p1511_p0, %p1505_p11 }
  0x22   :  { %1515 = shalt.err (!%p1512_p1)
}
  0x23   :  { %27 = dma.hbm_to_vmem [thread:$0]  %s1934_s0, 1024, %s1640_s27, [#allocation4], %s1592_s13, %s1592_s13, %s1593_s14  }
  0x24   :  { %s1594_s26 = smov [#allocation8]   ;;  %s1595_s29 = smov [#allocation9]  }
  0x25   :  { %s45_s28 = sshll.u32 %s1594_s26, 4  ;;  %s61_s30 = sshll.u32 %s1595_s29, 4  ;;  %s46_s28 = int_to_ptr.vmem [resolvable:$true] %s45_s28  ;;  %s1677_s30 = int_to_ptr.vmem [resolvable:$true] %s61_s30 }
  0x26   :  { %s1516_s10 = scalar_lea.hbm %s1936_s2, 1024 }
  0x27   :  { %p1517_p2 = scmp.ne.s32.totalorder %s1936_s2, %s1516_s10  ;;  %p1520_p3 = scmp.lt.u32.totalorder %s1516_s10, %s1936_s2 }
  0x29   :  { %p1522_p4 = pnand %p1520_p3, %p1517_p2 }
  0x2b   :  { %1525 = shalt.err (!%p1522_p4)
}
  0x2c   :  { %s1526_s0 = scalar_lea.vmem %s46_s28, 1024  ;;  %p1531_p6 = scmp.lt.s32.totalorder %s46_s28, %s46_s28 }
  0x2d   :  { %p1527_p5 = scmp.ne.s32.totalorder %s46_s28, %s1526_s0  ;;  %p1532_p7 = scmp.lt.s32.totalorder %s1526_s0, %s1526_s0 }
  0x2f   :  { %p1533_p8 = por %p1532_p7, %p1531_p6 }
  0x31   :  { %p1534_p9 = pnand %p1533_p8, %p1527_p5 }
  0x33   :  { %1537 = shalt.err (!%p1534_p9)
}
  0x34   :  { %51 = dma.hbm_to_vmem [thread:$0]  %s1936_s2, 1024, %s46_s28, [#allocation7], %s1592_s13, %s1592_s13, %s1593_s14  }
  0x35   :  { %s1538_s20 = scalar_lea.hbm %s1939_s5, 2048 }
  0x36   :  { %p1539_p10 = scmp.ne.s32.totalorder %s1939_s5, %s1538_s20  ;;  %p1542_p11 = scmp.lt.u32.totalorder %s1538_s20, %s1939_s5 }
  0x38   :  { %p1544_p12 = pnand %p1542_p11, %p1539_p10 }
  0x3a   :  { %1547 = shalt.err (!%p1544_p12)
}
  0x3b   :  { %s1548_s1 = scalar_lea.vmem %s1677_s30, 2048  ;;  %p1553_p0 = scmp.lt.s32.totalorder %s1677_s30, %s1677_s30 }
  0x3c   :  { %p1549_p13 = scmp.ne.s32.totalorder %s1677_s30, %s1548_s1  ;;  %p1554_p1 = scmp.lt.s32.totalorder %s1548_s1, %s1548_s1 }
  0x3e   :  { %p1555_p2 = por %p1554_p1, %p1553_p0 }
  0x40   :  { %p1556_p3 = pnand %p1555_p2, %p1549_p13 }
  0x42   :  { %1559 = shalt.err (!%p1556_p3)
}
  0x43   :  { %s1596_s2 = smov 128   ;;  %s1597_s13 = smov 8  }
  0x44   :  { %67 = dma.hbm_to_vmem [thread:$0]  %s1939_s5, 2048, %s1677_s30, [#allocation10], %s1596_s2, %s1596_s2, %s1597_s13  }
  0x45   :  { %1582 = dma.done.wait [#allocation4], 1024  }
  0x46   :  { %1583 = vsyncadd [#allocation4], 4294966272 }
  0x47   :  { %1584 = dma.done.wait [#allocation7], 2048  }
  0x48   :  { %1585 = vsyncadd [#allocation7], 4294965248 }
  0x49   :  { %1586 = dma.done.wait [#allocation10], 2048  }
  0x4a   :  { %1587 = vsyncadd [#allocation10], 4294965248  ;;  %v1598_v0 = vmov 0   ;;  %v1400_v1 = vld [vmem:[#allocation6] sm:$0xff]   ;;  %v1401_v2 = vld [vmem:[#allocation6 + $0x8] sm:$0xff]  }
  0x4b   :  { %1398 = vset.pattern.permute.xlu0 %v1598_v0  ;;  %1399 = vset.pattern.permute.xlu1 %v1598_v0  ;;  %v1402_v3 = vld [vmem:[#allocation6 + $0x10] sm:$0xff]   ;;  %v1403_v4 = vld [vmem:[#allocation6 + $0x18] sm:$0xff]   ;;  %v1408_v5 = vld [vmem:[#allocation3] sm:$0xff]  }
  0x4c   :  { %723 = vmatprep.mubr.bf16.mxu1 %v1598_v0  ;;  %1308 = vmatprep.subr.bf16.mxu0 %v1400_v1  ;;  %v1404_v6 = vld [vmem:[#allocation6 + $0x20] sm:$0xff]   ;;  %v1405_v7 = vld [vmem:[#allocation6 + $0x28] sm:$0xff]   ;;  %v397_v9 = vld [vmem:[%s1937_s3 + $0x10] sm:$0xff] }
  0x4d   :  { %1309 = vmatpush3.bf16.msra.mxu0 %v1400_v1  ;;  %1324 = vmatprep.mubr.bf16.mxu0 %v1408_v5  ;;  %v395_v8 = vld [vmem:[%s1937_s3] sm:$0xff]  ;;  %v396_v10 = vld [vmem:[%s1937_s3 + $0x8] sm:$0xff]  ;;  %v398_v11 = vld [vmem:[%s1937_s3 + $0x18] sm:$0xff] }
  0x4e   :  { %1310 = vmatprep.subr.bf16.mxu0 %v1401_v2  ;;  %413 = vperm.xlu0 %1398, %v395_v8   ;;  %v1406_v12 = vld [vmem:[#allocation6 + $0x30] sm:$0xff]   ;;  %v399_v13 = vld [vmem:[%s1937_s3 + $0x20] sm:$0xff]  ;;  %v400_v14 = vld [vmem:[%s1937_s3 + $0x28] sm:$0xff] }
  0x4f   :  { %423 = vperm.xlu1 %1399, %v397_v9   ;;  %v1416_v15 = vld [vmem:[#allocation9 + $0x4] ss:$8 sps:$4 sm:$0xff]   ;;  %v1418_v16 = vld [vmem:[#allocation9] ss:$8 sps:$4 sm:$0xff]   ;;  %v1419_v17 = vld [vmem:[#allocation9 + $0x14] ss:$8 sps:$4 sm:$0xff]  }
  0x50   :  { %v1407_v18 = vld [vmem:[#allocation6 + $0x38] sm:$0xff]   ;;  %691 = vmatprep.subr.bf16.mxu1 %v1416_v15  ;;  %v401_v19 = vld [vmem:[%s1937_s3 + $0x30] sm:$0xff]  ;;  %v1422_v22 = vld [vmem:[#allocation9 + $0x24] ss:$8 sps:$4 sm:$0xff]  }
  0x51   :  { %1311 = vmatpush3.bf16.msra.mxu0 %v1401_v2  ;;  %v402_v20 = vld [vmem:[%s1937_s3 + $0x38] sm:$0xff]  ;;  %692 = vmatpush1.bf16.msra.mxu1 %v1418_v16  ;;  %v1409_v23 = vld [vmem:[#allocation3 + $0x8] sm:$0xff]   ;;  %v403_v24 = vld [vmem:[%s1937_s3 + $0x40] sm:$0xff] }
  0x52   :  { %1312 = vmatprep.subr.bf16.mxu0 %v1402_v3  ;;  %418 = vperm.xlu0 %1398, %v396_v10   ;;  %v1421_v21 = vld [vmem:[#allocation9 + $0x10] ss:$8 sps:$4 sm:$0xff]   ;;  %v404_v25 = vld [vmem:[%s1937_s3 + $0x48] sm:$0xff]  ;;  %v1425_v28 = vld [vmem:[#allocation9 + $0x34] ss:$8 sps:$4 sm:$0xff]  }
  0x53   :  { %428 = vperm.xlu1 %1399, %v398_v11   ;;  %693 = vmatprep.subr.bf16.mxu1 %v1419_v17  ;;  %v1424_v26 = vld [vmem:[#allocation9 + $0x20] ss:$8 sps:$4 sm:$0xff]   ;;  %v1410_v27 = vld [vmem:[#allocation3 + $0x10] sm:$0xff]   ;;  %v1443_v33 = vld [vmem:[%s1938_s4 + $0x4] ss:$8 sps:$4 sm:$0xff]  }
  0x54   :  { %v407_v29 = vld [vmem:[%s1937_s3 + $0x60] sm:$0xff]  ;;  %v408_v30 = vld [vmem:[%s1937_s3 + $0x68] sm:$0xff]  ;;  %v1427_v31 = vld [vmem:[#allocation9 + $0x30] ss:$8 sps:$4 sm:$0xff]  }
  0x55   :  { %1313 = vmatpush3.bf16.msra.mxu0 %v1402_v3  ;;  %694 = vmatpush1.bf16.msra.mxu1 %v1421_v21  ;;  %v1756_v32 = vld [vmem:[%s1938_s4] ss:$8 sps:$4 sm:$0xff]   ;;  %v1428_v34 = vld [vmem:[#allocation9 + $0x44] ss:$8 sps:$4 sm:$0xff]   ;;  %v1411_v35 = vld [vmem:[#allocation3 + $0x18] sm:$0xff]  }
  0x56   :  { %1314 = vmatprep.subr.bf16.mxu0 %v1403_v4  ;;  %433 = vperm.xlu0 %1398, %v399_v13   ;;  %v1447_v36 = vld [vmem:[%s1938_s4 + $0x14] ss:$8 sps:$4 sm:$0xff]   ;;  %v1412_v37 = vld [vmem:[#allocation3 + $0x20] sm:$0xff]   ;;  %v1445_v43 = vld [vmem:[%s1938_s4 + $0x10] ss:$8 sps:$4 sm:$0xff]  }
  0x57   :  { %438 = vperm.xlu1 %1399, %v400_v14   ;;  %695 = vmatprep.subr.bf16.mxu1 %v1422_v22  ;;  %v405_v38 = vld [vmem:[%s1937_s3 + $0x50] sm:$0xff]  ;;  %v406_v39 = vld [vmem:[%s1937_s3 + $0x58] sm:$0xff]  ;;  %v1430_v40 = vld [vmem:[#allocation9 + $0x40] ss:$8 sps:$4 sm:$0xff]  }
  0x58   :  { %v1431_v41 = vld [vmem:[#allocation9 + $0x54] ss:$8 sps:$4 sm:$0xff]   ;;  %v1433_v45 = vld [vmem:[#allocation9 + $0x50] ss:$8 sps:$4 sm:$0xff]   ;;  %v1450_v46 = vld [vmem:[%s1938_s4 + $0x24] ss:$8 sps:$4 sm:$0xff]  }
  0x59   :  { %1315 = vmatpush3.bf16.msra.mxu0 %v1403_v4  ;;  %696 = vmatpush1.bf16.msra.mxu1 %v1424_v26  ;;  %v409_v42 = vld [vmem:[%s1937_s3 + $0x70] sm:$0xff]  ;;  %v410_v44 = vld [vmem:[%s1937_s3 + $0x78] sm:$0xff]  ;;  %v1434_v47 = vld [vmem:[#allocation9 + $0x64] ss:$8 sps:$4 sm:$0xff]  }
  0x5a   :  { %1316 = vmatprep.subr.bf16.mxu0 %v1404_v6  ;;  %443 = vperm.xlu0 %1398, %v401_v19   ;;  %v1413_v48 = vld [vmem:[#allocation3 + $0x28] sm:$0xff]   ;;  %v1414_v51 = vld [vmem:[#allocation3 + $0x30] sm:$0xff]   ;;  %v1440_v58 = vld [vmem:[#allocation8] sm:$0xff]  }
  0x5b   :  { %448 = vperm.xlu1 %1399, %v402_v20   ;;  %697 = vmatprep.subr.bf16.mxu1 %v1425_v28  ;;  %v1436_v49 = vld [vmem:[#allocation9 + $0x60] ss:$8 sps:$4 sm:$0xff]   ;;  %v1437_v52 = vld [vmem:[#allocation9 + $0x74] ss:$8 sps:$4 sm:$0xff]   ;;  %v1452_v54 = vld [vmem:[%s1938_s4 + $0x30] ss:$8 sps:$4 sm:$0xff]  }
  0x5c   :  { %v1448_v50 = vld [vmem:[%s1938_s4 + $0x20] ss:$8 sps:$4 sm:$0xff]   ;;  %v1454_v53 = vld [vmem:[%s1938_s4 + $0x34] ss:$8 sps:$4 sm:$0xff]   ;;  %v1457_v55 = vld [vmem:[%s1938_s4 + $0x44] ss:$8 sps:$4 sm:$0xff]  }
  0x5d   :  { %1317 = vmatpush3.bf16.msra.mxu0 %v1404_v6  ;;  %698 = vmatpush1.bf16.msra.mxu1 %v1427_v31  ;;  %v1439_v56 = vld [vmem:[#allocation9 + $0x70] ss:$8 sps:$4 sm:$0xff]   ;;  %v1455_v57 = vld [vmem:[%s1938_s4 + $0x40] ss:$8 sps:$4 sm:$0xff]   ;;  %v1461_v59 = vld [vmem:[%s1938_s4 + $0x54] ss:$8 sps:$4 sm:$0xff]  }
  0x5e   :  { %1318 = vmatprep.subr.bf16.mxu0 %v1405_v7  ;;  %453 = vperm.xlu0 %1398, %v403_v24   ;;  %v1415_v60 = vld [vmem:[#allocation3 + $0x38] sm:$0xff]   ;;  %v1464_v62 = vld [vmem:[%s1938_s4 + $0x64] ss:$8 sps:$4 sm:$0xff]   ;;  %v1462_v63 = vld [vmem:[%s1938_s4 + $0x60] ss:$8 sps:$4 sm:$0xff]  }
  0x5f   :  { %458 = vperm.xlu1 %1399, %v404_v25   ;;  %699 = vmatprep.subr.bf16.mxu1 %v1428_v34  ;;  %v1459_v61 = vld [vmem:[%s1938_s4 + $0x50] ss:$8 sps:$4 sm:$0xff]   ;;  %v1444_v1 = vld [vmem:[#allocation8 + $0x8] sm:$0xff]   ;;  %v1465_v4 = vld [vmem:[#allocation8 + $0x20] sm:$0xff]  }
  0x60   :  { %v1451_v2 = vld [vmem:[#allocation8 + $0x10] sm:$0xff]   ;;  %v1458_v3 = vld [vmem:[#allocation8 + $0x18] sm:$0xff]  }
  0x61   :  { %1319 = vmatpush3.bf16.msra.mxu0 %v1405_v7  ;;  %700 = vmatpush1.bf16.msra.mxu1 %v1430_v40  ;;  %v1468_v5 = vld [vmem:[%s1938_s4 + $0x74] ss:$8 sps:$4 sm:$0xff]   ;;  %v1466_v6 = vld [vmem:[%s1938_s4 + $0x70] ss:$8 sps:$4 sm:$0xff]   ;;  %v1469_v7 = vld [vmem:[#allocation8 + $0x28] sm:$0xff]  }
  0x62   :  { %1320 = vmatprep.subr.bf16.mxu0 %v1406_v12  ;;  %473 = vperm.xlu0 %1398, %v407_v29   ;;  %v1470_v8 = vld [vmem:[#allocation8 + $0x30] sm:$0xff]   ;;  %v1471_v9 = vld [vmem:[#allocation8 + $0x38] sm:$0xff]  }
  0x63   :  { %478 = vperm.xlu1 %1399, %v408_v30   ;;  %701 = vmatprep.subr.bf16.mxu1 %v1431_v41 }
  0x65   :  { %1321 = vmatpush3.bf16.msra.mxu0 %v1406_v12  ;;  %702 = vmatpush1.bf16.msra.mxu1 %v1433_v45 }
  0x66   :  { %1322 = vmatprep.subr.bf16.mxu0 %v1407_v18  ;;  %463 = vperm.xlu0 %1398, %v405_v38  }
  0x67   :  { %468 = vperm.xlu1 %1399, %v406_v39   ;;  %703 = vmatprep.subr.bf16.mxu1 %v1434_v47 }
  0x69   :  { %1323 = vmatpush3.bf16.msra.mxu0 %v1407_v18  ;;  %704 = vmatpush1.bf16.msra.mxu1 %v1436_v49 }
  0x6a   :  { %884 = vmatprep.subr.bf16.mxu0 %v1443_v33  ;;  %483 = vperm.xlu0 %1398, %v409_v42  }
  0x6b   :  { %488 = vperm.xlu1 %1399, %v410_v44   ;;  %705 = vmatprep.subr.bf16.mxu1 %v1437_v52 }
  0x6c   :  { %1325 = vmatmul.mubr.bf16.vlgmr.msra.gmra.mrb[0].mxu0 %v1409_v23 }
  0x6d   :  { %1328 = vmatprep.mubr.bf16.mxu0 %v1410_v27  ;;  %885 = vmatpush1.bf16.msra.mxu0 %v1756_v32 }
  0x6e   :  { %886 = vmatprep.subr.bf16.mxu0 %v1447_v36  ;;  %706 = vmatpush1.bf16.msra.mxu1 %v1439_v56 }
  0x6f   :  { %1340 = vmatprep.subr.bf16.mxu1 %v1443_v33 }
  0x71   :  { %887 = vmatpush1.bf16.msra.mxu0 %v1445_v43  ;;  %724 = vmatmul.mubr.bf16.vlgmr.msra.gmra.mrb[0].mxu1 %v1440_v58 }
  0x72   :  { %888 = vmatprep.subr.bf16.mxu0 %v1450_v46  ;;  %733 = vmatprep.mubr.bf16.mxu1 %v1598_v0 }
  0x73   :  { %1348 = vmatpush1.bf16.msra.mxu1 %v1756_v32 }
  0x74   :  { %1329 = vmatmul.mubr.bf16.gmra.mrb[4].mxu0 %v1411_v35  ;;  %1341 = vmatprep.subr.bf16.mxu1 %v1447_v36 }
  0x75   :  { %1332 = vmatprep.mubr.bf16.mxu0 %v1412_v37  ;;  %889 = vmatpush1.bf16.msra.mxu0 %v1448_v50 }
  0x76   :  { %890 = vmatprep.subr.bf16.mxu0 %v1454_v53 }
  0x77   :  { %1349 = vmatpush1.bf16.msra.mxu1 %v1445_v43 }
  0x78   :  { %1342 = vmatprep.subr.bf16.mxu1 %v1450_v46 }
  0x79   :  { %891 = vmatpush1.bf16.msra.mxu0 %v1452_v54  ;;  %734 = vmatmul.mubr.bf16.gmra.mrb[4].mxu1 %v1444_v1 }
  0x7a   :  { %892 = vmatprep.subr.bf16.mxu0 %v1457_v55  ;;  %743 = vmatprep.mubr.bf16.mxu1 %v1598_v0 }
  0x7b   :  { %1350 = vmatpush1.bf16.msra.mxu1 %v1448_v50 }
  0x7c   :  { %1333 = vmatmul.mubr.bf16.gmra.mrb[8].mxu0 %v1413_v48  ;;  %1343 = vmatprep.subr.bf16.mxu1 %v1454_v53 }
  0x7d   :  { %1336 = vmatprep.mubr.bf16.mxu0 %v1414_v51  ;;  %893 = vmatpush1.bf16.msra.mxu0 %v1455_v57 }
  0x7e   :  { %894 = vmatprep.subr.bf16.mxu0 %v1461_v59 }
  0x7f   :  { %1351 = vmatpush1.bf16.msra.mxu1 %v1452_v54 }
  0x80   :  { %1344 = vmatprep.subr.bf16.mxu1 %v1457_v55 }
  0x81   :  { %895 = vmatpush1.bf16.msra.mxu0 %v1459_v61  ;;  %744 = vmatmul.mubr.bf16.gmra.mrb[8].mxu1 %v1451_v2 }
  0x82   :  { %896 = vmatprep.subr.bf16.mxu0 %v1464_v62  ;;  %753 = vmatprep.mubr.bf16.mxu1 %v1598_v0 }
  0x83   :  { %1352 = vmatpush1.bf16.msra.mxu1 %v1455_v57 }
  0x84   :  { %1337 = vmatmul.mubr.bf16.gmra.mrb[12].mxu0 %v1415_v60  ;;  %1345 = vmatprep.subr.bf16.mxu1 %v1461_v59 }
  0x85   :  { %916 = vmatprep.mubr.bf16.mxu0 %v1598_v0  ;;  %897 = vmatpush1.bf16.msra.mxu0 %v1462_v63 }
  0x86   :  { %898 = vmatprep.subr.bf16.mxu0 %v1468_v5 }
  0x87   :  { %1353 = vmatpush1.bf16.msra.mxu1 %v1459_v61 }
  0x88   :  { %1346 = vmatprep.subr.bf16.mxu1 %v1464_v62 }
  0x89   :  { %754 = vmatmul.mubr.bf16.gmra.mrb[12].mxu1 %v1458_v3  ;;  %899 = vmatpush1.bf16.msra.mxu0 %v1466_v6 }
  0x8a   :  { %763 = vmatprep.mubr.bf16.mxu1 %v1598_v0 }
  0x8b   :  { %1354 = vmatpush1.bf16.msra.mxu1 %v1462_v63 }
  0x8c   :  { %1347 = vmatprep.subr.bf16.mxu1 %v1468_v5 }
  0x8f   :  { %1355 = vmatpush1.bf16.msra.mxu1 %v1466_v6 }
  0x91   :  { %764 = vmatmul.mubr.bf16.gmra.mrb[16].mxu1 %v1465_v4 }
  0x92   :  { %773 = vmatprep.mubr.bf16.mxu1 %v1598_v0 }
  0x99   :  { %774 = vmatmul.mubr.bf16.gmra.mrb[20].mxu1 %v1469_v7 }
  0x9a   :  { %783 = vmatprep.mubr.bf16.mxu1 %v1598_v0 }
  0xa1   :  { %784 = vmatmul.mubr.bf16.gmra.mrb[24].mxu1 %v1470_v8 }
  0xa2   :  { %793 = vmatprep.mubr.bf16.mxu1 %v1598_v0 }
  0xa9   :  { %794 = vmatmul.mubr.bf16.gmra.mrb[28].mxu1 %v1471_v9 }
  0xaa   :  { %976 = vmatprep.mubr.bf16.mxu1 %v1598_v0 }
  0xcd   :  { %v414_v10 = vpop.permute.xlu0 %413 }
  0xce   :  { %v424_v11 = vpop.permute.xlu1 %423 }
  0xd1   :  { %v419_v12 = vpop.permute.xlu0 %418 }
  0xd2   :  { %v429_v13 = vpop.permute.xlu1 %428 }
  0xd5   :  { %v434_v14 = vpop.permute.xlu0 %433 }
  0xd6   :  { %v439_v15 = vpop.permute.xlu1 %438 }
  0xd9   :  { %v444_v16 = vpop.permute.xlu0 %443 }
  0xda   :  { %v449_v17 = vpop.permute.xlu1 %448 }
  0xdd   :  { %v454_v24 = vpop.permute.xlu0 %453 }
  0xde   :  { %v459_v27 = vpop.permute.xlu1 %458 }
  0xe1   :  { %v474_v32 = vpop.permute.xlu0 %473 }
  0xe2   :  { %v479_v34 = vpop.permute.xlu1 %478 }
  0xe5   :  { %v464_v42 = vpop.permute.xlu0 %463 }
  0xe6   :  { %v469_v44 = vpop.permute.xlu1 %468 }
  0xe9   :  { %v484_v53 = vpop.permute.xlu0 %483 }
  0xea   :  { %v489_v55 = vpop.permute.xlu1 %488 }
 0x13f   :  { %v1326_v18 = vpop.f32.mrb[0].mxu0 }
 0x140   :  { %v281_v19 = vpop.f32.mrb[1].mxu0  ;;  %v493_v21 = vmul.f32 %v1326_v18, %v424_v11 }
 0x141   :  { %v1327_v20 = vpop.f32.mrb[2].mxu0  ;;  %v491_v25 = vmul.f32 %v414_v10, %v281_v19 }
 0x142   :  { %v494_v22 = vmul.f32 %v1327_v20, %v429_v13  ;;  %v284_v23 = vpop.f32.mrb[3].mxu0 }
 0x143   :  { %v492_v26 = vmul.f32 %v419_v12, %v284_v23 }
 0x144   :  { %v508_v28 = vpack.c.bf16 %v494_v22, %v493_v21  ;;  %v725_v56 = vpop.f32.mrb[0].mxu1 }
 0x145   :  { %v507_v29 = vpack.c.bf16 %v492_v26, %v491_v25  ;;  %v727_v58 = vpop.f32.mrb[1].mxu1  ;;  %v999_v26 = vlaneseq }
 0x146   :  { %v729_v60 = vpop.f32.mrb[2].mxu1 }
 0x147   :  { %v1330_v30 = vpop.f32.mrb[4].mxu0  ;;  %917 = vmatmul.mubr.bf16.vlgmr.msra.gmra.mrb[16].mxu0 %v507_v29  ;;  %v731_v62 = vpop.f32.mrb[3].mxu1  ;;  %v997_v29 = vld [vmem:[%s1940_s6] sm:$0x3]  ;;  %s1599_s6 = smov [#allocation11]  }
 0x148   :  { %v297_v31 = vpop.f32.mrb[5].mxu0  ;;  %926 = vmatprep.mubr.bf16.mxu0 %v1598_v0  ;;  %v497_v35 = vmul.f32 %v1330_v30, %v444_v16  ;;  %s1190_s17 = sshll.u32 %s1599_s6, 4  ;;  %s1191_s17 = int_to_ptr.vmem [resolvable:$true] %s1190_s17 }
 0x149   :  { %v1331_v33 = vpop.f32.mrb[6].mxu0  ;;  %v495_v38 = vmul.f32 %v434_v14, %v297_v31  ;;  %s1560_s18 = scalar_lea.vmem %s1191_s17, 2048  ;;  %p1565_p5 = scmp.lt.s32.totalorder %s1191_s17, %s1191_s17 }
 0x14a   :  { %v498_v36 = vmul.f32 %v1331_v33, %v449_v17  ;;  %v300_v37 = vpop.f32.mrb[7].mxu0  ;;  %p1561_p4 = scmp.ne.s32.totalorder %s1191_s17, %s1560_s18  ;;  %p1566_p6 = scmp.lt.s32.totalorder %s1560_s18, %s1560_s18 }
 0x14b   :  { %v496_v39 = vmul.f32 %v439_v15, %v300_v37 }
 0x14c   :  { %v510_v40 = vpack.c.bf16 %v498_v36, %v497_v35  ;;  %v735_v7 = vpop.f32.mrb[4].mxu1  ;;  %p1567_p7 = por %p1566_p6, %p1565_p5 }
 0x14d   :  { %v509_v41 = vpack.c.bf16 %v496_v39, %v495_v38  ;;  %v737_v8 = vpop.f32.mrb[5].mxu1 }
 0x14e   :  { %v739_v9 = vpop.f32.mrb[6].mxu1  ;;  %p1568_p8 = pnand %p1567_p7, %p1561_p4 }
 0x14f   :  { %v1334_v43 = vpop.f32.mrb[8].mxu0  ;;  %927 = vmatmul.mubr.bf16.gmra.mrb[20].mxu0 %v508_v28  ;;  %v741_v10 = vpop.f32.mrb[7].mxu1 }
 0x150   :  { %v313_v45 = vpop.f32.mrb[9].mxu0  ;;  %936 = vmatprep.mubr.bf16.mxu0 %v1598_v0  ;;  %v501_v47 = vmul.f32 %v1334_v43, %v464_v42 }
 0x151   :  { %v1335_v46 = vpop.f32.mrb[10].mxu0  ;;  %v499_v50 = vmul.f32 %v454_v24, %v313_v45 }
 0x152   :  { %v502_v48 = vmul.f32 %v1335_v46, %v469_v44  ;;  %v316_v49 = vpop.f32.mrb[11].mxu0 }
 0x153   :  { %v500_v51 = vmul.f32 %v459_v27, %v316_v49  ;;  %v1000_v27 = vshrl.u32 %v999_v26, 7 }
 0x154   :  { %v512_v52 = vpack.c.bf16 %v502_v48, %v501_v47  ;;  %v1831_v11 = vpop.f32.mrb[8].mxu1 }
 0x155   :  { %v511_v54 = vpack.c.bf16 %v500_v51, %v499_v50  ;;  %v1833_v12 = vpop.f32.mrb[9].mxu1  ;;  %v1001_v28 = vsub.s32 0, %v1000_v27  ;;  %v1005_v30 = vsub.s32 1, %v1000_v27 }
 0x156   :  { %v1836_v13 = vpop.f32.mrb[10].mxu1 }
 0x157   :  { %v1338_v57 = vpop.f32.mrb[12].mxu0  ;;  %937 = vmatmul.mubr.bf16.gmra.mrb[24].mxu0 %v509_v41  ;;  %v1838_v14 = vpop.f32.mrb[11].mxu1  ;;  %v1867_v31 = vrot.slane %v997_v29, %v1001_v28  ;;  %v1869_v33 = vrot.slane %v997_v29, %v1005_v30 }
 0x158   :  { %v329_v59 = vpop.f32.mrb[13].mxu0  ;;  %946 = vmatprep.mubr.bf16.mxu0 %v1598_v0  ;;  %v505_v63 = vmul.f32 %v1338_v57, %v484_v53 }
 0x159   :  { %v1339_v61 = vpop.f32.mrb[14].mxu0  ;;  %v503_v3 = vmul.f32 %v474_v32, %v329_v59 }
 0x15a   :  { %v506_v1 = vmul.f32 %v1339_v61, %v489_v55  ;;  %v332_v2 = vpop.f32.mrb[15].mxu0 }
 0x15b   :  { %v504_v4 = vmul.f32 %v479_v34, %v332_v2 }
 0x15c   :  { %v514_v5 = vpack.c.bf16 %v506_v1, %v505_v63  ;;  %v1840_v15 = vpop.f32.mrb[12].mxu1 }
 0x15d   :  { %v513_v6 = vpack.c.bf16 %v504_v4, %v503_v3  ;;  %v1842_v16 = vpop.f32.mrb[13].mxu1 }
 0x15e   :  { %v1844_v17 = vpop.f32.mrb[14].mxu1 }
 0x15f   :  { %947 = vmatmul.mubr.bf16.gmra.mrb[28].mxu0 %v510_v40  ;;  %977 = vmatmul.mubr.bf16.vlgmr.msra.gmra.mrb[24].mxu1 %v513_v6  ;;  %v1846_v18 = vpop.f32.mrb[15].mxu1 }
 0x160   :  { %956 = vmatprep.mubr.bf16.mxu0 %v1598_v0  ;;  %986 = vmatprep.mubr.bf16.mxu1 %v1598_v0 }
 0x164   :  { %v1848_v19 = vpop.f32.mrb[16].mxu1 }
 0x165   :  { %v1850_v20 = vpop.f32.mrb[17].mxu1 }
 0x166   :  { %v1852_v21 = vpop.f32.mrb[18].mxu1 }
 0x167   :  { %957 = vmatmul.mubr.bf16.gmra.mrb[32].mxu0 %v511_v54  ;;  %987 = vmatmul.mubr.bf16.gmra.mrb[28].mxu1 %v514_v5 }
 0x168   :  { %966 = vmatprep.mubr.bf16.mxu0 %v1598_v0  ;;  %v1854_v0 = vpop.f32.mrb[19].mxu1 }
 0x16c   :  { %v1856_v22 = vpop.f32.mrb[20].mxu1 }
 0x16d   :  { %v1858_v23 = vpop.f32.mrb[21].mxu1 }
 0x16e   :  { %v1860_v24 = vpop.f32.mrb[22].mxu1 }
 0x16f   :  { %967 = vmatmul.mubr.bf16.gmra.mrb[36].mxu0 %v512_v52  ;;  %v1862_v25 = vpop.f32.mrb[23].mxu1 }
 0x21a   :  { %v918_v32 = vpop.f32.mrb[16].mxu0 }
 0x21b   :  { %v919_v34 = vadd.f32 %v918_v32, %v725_v56  ;;  %v920_v35 = vpop.f32.mrb[17].mxu0 }
 0x21c   :  { %v921_v36 = vadd.f32 %v920_v35, %v727_v58  ;;  %v922_v37 = vpop.f32.mrb[18].mxu0 }
 0x21d   :  { %v1009_v38 = vadd.f32 %v1867_v31, %v919_v34  ;;  %v923_v39 = vadd.f32 %v922_v37, %v729_v60  ;;  %v924_v40 = vpop.f32.mrb[19].mxu0 }
 0x21e   :  { %v1010_v41 = vadd.f32 %v1869_v33, %v921_v36  ;;  %v925_v42 = vadd.f32 %v924_v40, %v731_v62 }
 0x21f   :  { %v1041_v43 = vmax.f32 %v1009_v38, 0.0  ;;  %v1011_v44 = vadd.f32 %v1867_v31, %v923_v39 }
 0x220   :  { %v1042_v45 = vmax.f32 %v1010_v41, 0.0  ;;  %v1012_v46 = vadd.f32 %v1869_v33, %v925_v42 }
 0x221   :  { %v1043_v47 = vmax.f32 %v1011_v44, 0.0 }
 0x222   :  { %v1276_v48 = vpack.c.bf16 %v1042_v45, %v1041_v43  ;;  %v1044_v49 = vmax.f32 %v1012_v46, 0.0  ;;  %v928_v50 = vpop.f32.mrb[20].mxu0 }
 0x223   :  { %v929_v51 = vadd.f32 %v928_v50, %v735_v7  ;;  %v930_v52 = vpop.f32.mrb[21].mxu0 }
 0x224   :  { %1169 = vst [vmem:[#allocation11] sm:$0xff] %v1276_v48  ;;  %v1277_v53 = vpack.c.bf16 %v1044_v49, %v1043_v47  ;;  %v931_v54 = vadd.f32 %v930_v52, %v737_v8  ;;  %v932_v55 = vpop.f32.mrb[22].mxu0 }
 0x225   :  { %v1013_v56 = vadd.f32 %v1867_v31, %v929_v51  ;;  %v933_v57 = vadd.f32 %v932_v55, %v739_v9  ;;  %v934_v58 = vpop.f32.mrb[23].mxu0 }
 0x226   :  { %1170 = vst [vmem:[#allocation11 + $0x8] sm:$0xff] %v1277_v53  ;;  %v1014_v59 = vadd.f32 %v1869_v33, %v931_v54  ;;  %v935_v60 = vadd.f32 %v934_v58, %v741_v10 }
 0x227   :  { %v1045_v61 = vmax.f32 %v1013_v56, 0.0  ;;  %v1015_v62 = vadd.f32 %v1867_v31, %v933_v57 }
 0x228   :  { %v1046_v63 = vmax.f32 %v1014_v59, 0.0  ;;  %v1016_v1 = vadd.f32 %v1869_v33, %v935_v60 }
 0x229   :  { %v1047_v2 = vmax.f32 %v1015_v62, 0.0 }
 0x22a   :  { %v1278_v3 = vpack.c.bf16 %v1046_v63, %v1045_v61  ;;  %v1048_v4 = vmax.f32 %v1016_v1, 0.0  ;;  %v938_v5 = vpop.f32.mrb[24].mxu0 }
 0x22b   :  { %v939_v6 = vadd.f32 %v938_v5, %v1831_v11  ;;  %v940_v7 = vpop.f32.mrb[25].mxu0 }
 0x22c   :  { %1171 = vst [vmem:[#allocation11 + $0x10] sm:$0xff] %v1278_v3  ;;  %v1279_v8 = vpack.c.bf16 %v1048_v4, %v1047_v2  ;;  %v941_v9 = vadd.f32 %v940_v7, %v1833_v12  ;;  %v942_v26 = vpop.f32.mrb[26].mxu0 }
 0x22d   :  { %v1017_v10 = vadd.f32 %v1867_v31, %v939_v6  ;;  %v943_v27 = vadd.f32 %v942_v26, %v1836_v13  ;;  %v944_v28 = vpop.f32.mrb[27].mxu0 }
 0x22e   :  { %1172 = vst [vmem:[#allocation11 + $0x18] sm:$0xff] %v1279_v8  ;;  %v1018_v29 = vadd.f32 %v1869_v33, %v941_v9  ;;  %v945_v30 = vadd.f32 %v944_v28, %v1838_v14 }
 0x22f   :  { %v1049_v32 = vmax.f32 %v1017_v10, 0.0  ;;  %v1019_v34 = vadd.f32 %v1867_v31, %v943_v27 }
 0x230   :  { %v1050_v11 = vmax.f32 %v1018_v29, 0.0  ;;  %v1020_v35 = vadd.f32 %v1869_v33, %v945_v30 }
 0x231   :  { %v1051_v36 = vmax.f32 %v1019_v34, 0.0 }
 0x232   :  { %v1280_v37 = vpack.c.bf16 %v1050_v11, %v1049_v32  ;;  %v1052_v12 = vmax.f32 %v1020_v35, 0.0  ;;  %v948_v38 = vpop.f32.mrb[28].mxu0  ;;  %v978_v39 = vpop.f32.mrb[24].mxu1 }
 0x233   :  { %v949_v40 = vadd.f32 %v948_v38, %v1840_v15  ;;  %v1033_v13 = vadd.f32 %v1867_v31, %v978_v39  ;;  %v950_v41 = vpop.f32.mrb[29].mxu0  ;;  %v980_v42 = vpop.f32.mrb[25].mxu1 }
 0x234   :  { %1173 = vst [vmem:[#allocation11 + $0x20] sm:$0xff] %v1280_v37  ;;  %v1281_v43 = vpack.c.bf16 %v1052_v12, %v1051_v36  ;;  %v951_v14 = vadd.f32 %v950_v41, %v1842_v16  ;;  %v1034_v44 = vadd.f32 %v1869_v33, %v980_v42  ;;  %v952_v45 = vpop.f32.mrb[30].mxu0  ;;  %v982_v46 = vpop.f32.mrb[26].mxu1 }
 0x235   :  { %v1021_v47 = vadd.f32 %v1867_v31, %v949_v40  ;;  %v1065_v48 = vmax.f32 %v1033_v13, 0.0  ;;  %v953_v49 = vadd.f32 %v952_v45, %v1844_v17  ;;  %v1035_v50 = vadd.f32 %v1867_v31, %v982_v46  ;;  %v954_v15 = vpop.f32.mrb[31].mxu0  ;;  %v984_v51 = vpop.f32.mrb[27].mxu1 }
 0x236   :  { %1174 = vst [vmem:[#allocation11 + $0x28] sm:$0xff] %v1281_v43  ;;  %v1022_v52 = vadd.f32 %v1869_v33, %v951_v14  ;;  %v1066_v53 = vmax.f32 %v1034_v44, 0.0  ;;  %v955_v54 = vadd.f32 %v954_v15, %v1846_v18  ;;  %v1036_v16 = vadd.f32 %v1869_v33, %v984_v51 }
 0x237   :  { %v1053_v55 = vmax.f32 %v1021_v47, 0.0  ;;  %v1023_v56 = vadd.f32 %v1867_v31, %v953_v49  ;;  %v1067_v57 = vmax.f32 %v1035_v50, 0.0 }
 0x238   :  { %v1054_v58 = vmax.f32 %v1022_v52, 0.0  ;;  %v1288_v59 = vpack.c.bf16 %v1066_v53, %v1065_v48  ;;  %v1024_v17 = vadd.f32 %v1869_v33, %v955_v54  ;;  %v1068_v60 = vmax.f32 %v1036_v16, 0.0 }
 0x239   :  { %v1055_v61 = vmax.f32 %v1023_v56, 0.0 }
 0x23a   :  { %v1282_v62 = vpack.c.bf16 %v1054_v58, %v1053_v55  ;;  %1181 = vst [vmem:[#allocation11 + $0x60] sm:$0xff] %v1288_v59  ;;  %v1056_v63 = vmax.f32 %v1024_v17, 0.0  ;;  %v1289_v1 = vpack.c.bf16 %v1068_v60, %v1067_v57  ;;  %v958_v2 = vpop.f32.mrb[32].mxu0  ;;  %v988_v3 = vpop.f32.mrb[28].mxu1 }
 0x23b   :  { %v959_v18 = vadd.f32 %v958_v2, %v1848_v19  ;;  %v1037_v4 = vadd.f32 %v1867_v31, %v988_v3  ;;  %v960_v5 = vpop.f32.mrb[33].mxu0  ;;  %v990_v6 = vpop.f32.mrb[29].mxu1 }
 0x23c   :  { %1175 = vst [vmem:[#allocation11 + $0x30] sm:$0xff] %v1282_v62  ;;  %v1283_v7 = vpack.c.bf16 %v1056_v63, %v1055_v61  ;;  %1182 = vst [vmem:[#allocation11 + $0x68] sm:$0xff] %v1289_v1  ;;  %v961_v8 = vadd.f32 %v960_v5, %v1850_v20  ;;  %v1038_v9 = vadd.f32 %v1869_v33, %v990_v6  ;;  %v962_v26 = vpop.f32.mrb[34].mxu0  ;;  %v992_v10 = vpop.f32.mrb[30].mxu1 }
 0x23d   :  { %v1025_v27 = vadd.f32 %v1867_v31, %v959_v18  ;;  %v1069_v28 = vmax.f32 %v1037_v4, 0.0  ;;  %v963_v29 = vadd.f32 %v962_v26, %v1852_v21  ;;  %v1039_v19 = vadd.f32 %v1867_v31, %v992_v10  ;;  %v964_v30 = vpop.f32.mrb[35].mxu0  ;;  %v994_v32 = vpop.f32.mrb[31].mxu1 }
 0x23e   :  { %1176 = vst [vmem:[#allocation11 + $0x38] sm:$0xff] %v1283_v7  ;;  %v1026_v34 = vadd.f32 %v1869_v33, %v961_v8  ;;  %v1070_v11 = vmax.f32 %v1038_v9, 0.0  ;;  %v965_v35 = vadd.f32 %v964_v30, %v1854_v0  ;;  %v1040_v20 = vadd.f32 %v1869_v33, %v994_v32 }
 0x23f   :  { %v1057_v36 = vmax.f32 %v1025_v27, 0.0  ;;  %v1027_v37 = vadd.f32 %v1867_v31, %v963_v29  ;;  %v1071_v12 = vmax.f32 %v1039_v19, 0.0 }
 0x240   :  { %v1058_v38 = vmax.f32 %v1026_v34, 0.0  ;;  %v1290_v39 = vpack.c.bf16 %v1070_v11, %v1069_v28  ;;  %v1028_v21 = vadd.f32 %v1869_v33, %v965_v35  ;;  %v1072_v40 = vmax.f32 %v1040_v20, 0.0 }
 0x241   :  { %v1059_v13 = vmax.f32 %v1027_v37, 0.0 }
 0x242   :  { %v1284_v41 = vpack.c.bf16 %v1058_v38, %v1057_v36  ;;  %1183 = vst [vmem:[#allocation11 + $0x70] sm:$0xff] %v1290_v39  ;;  %v1060_v42 = vmax.f32 %v1028_v21, 0.0  ;;  %v1291_v43 = vpack.c.bf16 %v1072_v40, %v1071_v12  ;;  %v968_v14 = vpop.f32.mrb[36].mxu0 }
 0x243   :  { %v969_v44 = vadd.f32 %v968_v14, %v1856_v22  ;;  %v970_v0 = vpop.f32.mrb[37].mxu0 }
 0x244   :  { %1177 = vst [vmem:[#allocation11 + $0x40] sm:$0xff] %v1284_v41  ;;  %v1285_v45 = vpack.c.bf16 %v1060_v42, %v1059_v13  ;;  %1184 = vst [vmem:[#allocation11 + $0x78] sm:$0xff] %v1291_v43  ;;  %v971_v46 = vadd.f32 %v970_v0, %v1858_v23  ;;  %v972_v47 = vpop.f32.mrb[38].mxu0 }
 0x245   :  { %v1029_v48 = vadd.f32 %v1867_v31, %v969_v44  ;;  %v973_v49 = vadd.f32 %v972_v47, %v1860_v24  ;;  %v974_v50 = vpop.f32.mrb[39].mxu0 }
 0x246   :  { %1178 = vst [vmem:[#allocation11 + $0x48] sm:$0xff] %v1285_v45  ;;  %v1030_v15 = vadd.f32 %v1869_v33, %v971_v46  ;;  %v975_v51 = vadd.f32 %v974_v50, %v1862_v25 }
 0x247   :  { %v1061_v52 = vmax.f32 %v1029_v48, 0.0  ;;  %v1031_v22 = vadd.f32 %v1867_v31, %v973_v49 }
 0x248   :  { %v1062_v53 = vmax.f32 %v1030_v15, 0.0  ;;  %v1032_v54 = vadd.f32 %v1869_v33, %v975_v51 }
 0x249   :  { %v1063_v16 = vmax.f32 %v1031_v22, 0.0 }
 0x24a   :  { %v1286_v23 = vpack.c.bf16 %v1062_v53, %v1061_v52  ;;  %v1064_v55 = vmax.f32 %v1032_v54, 0.0 }
 0x24c   :  { %1179 = vst [vmem:[#allocation11 + $0x50] sm:$0xff] %v1286_v23  ;;  %v1287_v56 = vpack.c.bf16 %v1064_v55, %v1063_v16 }
 0x24e   :  { %1180 = vst [vmem:[#allocation11 + $0x58] sm:$0xff] %v1287_v56 }
 0x24f   :  { %1571 = shalt.err (!%p1568_p8)
}
 0x250   :  { %s1572_s21 = scalar_lea.hbm %s1941_s7, 2048 }
 0x251   :  { %p1573_p9 = scmp.ne.s32.totalorder %s1941_s7, %s1572_s21  ;;  %p1576_p10 = scmp.lt.u32.totalorder %s1572_s21, %s1941_s7 }
 0x253   :  { %p1578_p11 = pnand %p1576_p10, %p1573_p9 }
 0x255   :  { %1581 = shalt.err (!%p1578_p11)
}
 0x256   :  { %1196 = dma.vmem_to_hbm [thread:$0]  %s1191_s17, 2048, %s1941_s7, [#allocation5], %s1596_s2, %s1596_s2, %s1597_s13  }
 0x257   :  { %1588 = dma.done.wait [#allocation5], 2048  }
 0x258   :  { %1589 = vsyncadd [#allocation5], 4294965248 }
 0x259   :  { %1200 = vsyncpa [#allocation4], 1 }
 0x25a   :  { %1201 = vsyncpa [#allocation7], 1 }
 0x25b   :  { %1202 = vsyncpa [#allocation10], 1 }
 0x25c   :  { %1203 = vsyncpa [#allocation5], 1 }

</bundles_post_ra>
